<compile_context>
chip_gen: v7x
topology: tpu7x:2x2x1
jax: 0.10.0
libtpu: 0.0.40
codegen_flags: <defaults>
</compile_context>

<pallas_src>
import numpy as np
import jax
import jax.numpy as jnp
from jax.experimental import pallas as pl
from jax.experimental.pallas import tpu as pltpu  # noqa: F401  (TPU backend)


# ----------------------------- config (small) -------------------------------
BATCH = 2
NUM_STAGES = 4
HIDDEN_SIZES = (8, 16, 32, 64)      # per-stage encoder channel dims
LENGTHS = (64, 32, 16, 8)           # per-stage sequence lengths (stage 0 = L0)
DECODER_HIDDEN = 64                 # decoder_hidden_size D
NUM_LABELS = 8
BN_EPS = 1e-5
L0 = LENGTHS[0]

LANE_PAD = 128                      # every kernel tensor is 128 lanes wide
K_PAD = 128                         # sum(HIDDEN_SIZES)=120 padded to 128
R0 = BATCH * L0                     # 128 output rows: exactly one MXU row block
X_ROWS = 2 * R0                     # 256 = stage0 rows | stage1-3 rows | zero pad

ROW_OFF = (0,
           R0,
           R0 + BATCH * LENGTHS[1],
           R0 + BATCH * (LENGTHS[1] + LENGTHS[2]))
COL_OFF = (0,
           HIDDEN_SIZES[0],
           HIDDEN_SIZES[0] + HIDDEN_SIZES[1],
           HIDDEN_SIZES[0] + HIDDEN_SIZES[1] + HIDDEN_SIZES[2])

# CONST slab row layout
CS_WB = 0                           # block-diag folded proj weights (128, 128)
CS_MR = CS_WB + K_PAD               # interp matrix for stages 1-3  (128, 128)
CS_WC = CS_MR + R0                  # classifier weights            (128, 128)
CS_MISC = CS_WC + LANE_PAD          # row 0: shift, row 1: cls bias (8, 128)
CONST_ROWS = CS_MISC + 8            # 392

assert R0 == 128 and sum(HIDDEN_SIZES) <= K_PAD
assert ROW_OFF[3] + BATCH * LENGTHS[3] <= X_ROWS
assert BATCH * sum(LENGTHS[1:]) <= LANE_PAD


# ------------------------- interpolation matrices ----------------------------
def linear_interp_matrix(l_in: int, l_out: int) -> np.ndarray:
    """Matrix M (l_out, l_in) such that M @ x == F.interpolate(x, size=l_out,
    mode='linear', align_corners=False) along the length axis.  Every row sums
    to 1 (needed for the bias folding)."""
    if l_in == l_out:
        return np.eye(l_out, dtype=np.float32)
    j = np.arange(l_out)
    scale = l_in / l_out
    src = (j + 0.5) * scale - 0.5
    src = np.maximum(src, 0.0)              # PyTorch clamps negative src to 0
    x0 = np.minimum(np.floor(src).astype(np.int64), l_in - 1)
    x1 = np.minimum(x0 + 1, l_in - 1)
    lam = (src - x0).astype(np.float32)
    m = np.zeros((l_out, l_in), dtype=np.float32)
    m[j, x0] += (1.0 - lam)
    m[j, x1] += lam
    return m


# ----------------------- one-time constant fold & pack ------------------------
def prepare_const_slab(params) -> jnp.ndarray:
    """Fold proj/fuse/BN/classifier into one (392, 128) f32 slab.  Pure numpy;
    runs once at setup — never per call."""
    D = DECODER_HIDDEN
    bn_scale = np.asarray(params["bn_scale"], np.float32)        # (1, D)
    bn_shift = np.asarray(params["bn_shift"], np.float32)        # (1, D)

    wbig = np.zeros((K_PAD, LANE_PAD), np.float32)
    bias_acc = np.zeros((1, D), np.float32)
    for s in range(NUM_STAGES):
        pw = np.asarray(params["proj_w"][s], np.float32)         # (C_s, D)
        pb = np.asarray(params["proj_b"][s], np.float32)         # (1, D)
        fu = np.asarray(params["fuse"][s], np.float32)           # (D, D)
        wfold = (pw @ fu) * bn_scale                             # (C_s, D)
        c0, c = COL_OFF[s], HIDDEN_SIZES[s]
        wbig[c0:c0 + c, :D] = wfold                              # block-diagonal
        bias_acc += pb @ fu
    shift = bn_shift + bn_scale * bias_acc                       # (1, D)

    # Block-diag (over batch) interp matrices for stages 1..3 only
    # (stage 0 is the identity and is added directly in the kernel).
    mrest = np.zeros((R0, LANE_PAD), np.float32)
    col = 0
    for s in range(1, NUM_STAGES):
        ms = linear_interp_matrix(LENGTHS[s], L0)
        for b in range(BATCH):
            mrest[b * L0:(b + 1) * L0,
                  col + b * LENGTHS[s]: col + (b + 1) * LENGTHS[s]] = ms
        col += BATCH * LENGTHS[s]

    wcls = np.zeros((LANE_PAD, LANE_PAD), np.float32)
    wcls[:D, :NUM_LABELS] = np.asarray(params["cls_w"], np.float32)

    misc = np.zeros((8, LANE_PAD), np.float32)
    misc[0, :D] = shift[0]
    misc[1, :NUM_LABELS] = np.asarray(params["cls_b"], np.float32)[0]

    slab = np.concatenate([wbig, mrest, wcls, misc], axis=0)
    assert slab.shape == (CONST_ROWS, LANE_PAD)
    return jnp.asarray(slab)


# ------------------------------- the kernel ----------------------------------
def decode_head_kernel(x_ref, const_ref, out_ref):
    # Packed constants (all 128-lane, sublane-aligned static slices).
    wbig = const_ref[CS_WB:CS_WB + K_PAD, :]        # (128, 128) block-diag proj
    mrest = const_ref[CS_MR:CS_MR + R0, :]          # (128, 128) interp (stages 1-3)
    wcls = const_ref[CS_WC:CS_WC + LANE_PAD, :]     # (128, 128) classifier
    misc = const_ref[CS_MISC:CS_MISC + 8, :]        # (8, 128)
    shift = misc[0:1, :]                            # folded bias + BN shift
    bcls = misc[1:2, :]                             # classifier bias

    # One K=128 matmul replaces the four skinny per-stage projections.
    p = jnp.dot(x_ref[...], wbig, preferred_element_type=jnp.float32)   # (256, 128)

    # Stage 0 interpolation is the identity; only stages 1-3 go through M_rest.
    h = p[0:R0, :] + jnp.dot(mrest, p[R0:2 * R0, :],
                             preferred_element_type=jnp.float32) + shift
    h = jnp.maximum(h, 0.0)                         # ReLU; Dropout identity (eval)

    # Classifier 1x1 conv, full-width 128-lane store.
    out_ref[...] = (jnp.dot(h, wcls, preferred_element_type=jnp.float32)
                    + bcls).astype(out_ref.dtype)


# ------------------------------- the wrapper ----------------------------------
def _pack_activations(xs):
    """Build X_big (256, 128): stage s activations at rows ROW_OFF[s], cols
    COL_OFF[s]; zero elsewhere.  One small XLA fusion per call."""
    xbig = jnp.zeros((X_ROWS, LANE_PAD), jnp.float32)
    for s in range(NUM_STAGES):
        n, c = BATCH * LENGTHS[s], HIDDEN_SIZES[s]
        xbig = xbig.at[ROW_OFF[s]:ROW_OFF[s] + n,
                       COL_OFF[s]:COL_OFF[s] + c].set(
            xs[s].reshape(n, c).astype(jnp.float32))
    return xbig


def make_decode_head(params):
    """Fold constants once; return a jitted callable xs -> (B, NL, L0)."""
    const_slab = prepare_const_slab(params)   # device-resident, built once

    flops = 2 * X_ROWS * K_PAD * LANE_PAD + 2 * R0 * R0 * LANE_PAD \
        + 2 * R0 * LANE_PAD * LANE_PAD
    bytes_accessed = 4 * (X_ROWS * LANE_PAD + CONST_ROWS * LANE_PAD
                          + R0 * LANE_PAD)

    call = pl.pallas_call(
        decode_head_kernel,
        out_shape=jax.ShapeDtypeStruct((R0, LANE_PAD), jnp.float32),
        cost_estimate=pl.CostEstimate(flops=flops, transcendentals=0,
                                      bytes_accessed=bytes_accessed),
    )

    @jax.jit
    def run(x0, x1, x2, x3):
        xbig = _pack_activations((x0, x1, x2, x3))
        out = call(xbig, const_slab)
        logits = out[:, :NUM_LABELS].reshape(BATCH, L0, NUM_LABELS)
        return jnp.transpose(logits, (0, 2, 1))    # NCL: (B, NL, L0)

    return run


# --------------------------- plain-JAX reference ------------------------------
def reference(xs, params):
    """Un-folded reference path — also validates the host-side folding."""
    ups = []
    for s in range(NUM_STAGES):
        proj = xs[s] @ params["proj_w"][s] + params["proj_b"][s]          # (B, L_s, D)
        up = jnp.einsum("ol,bld->bod", params["interp"][s], proj)         # (B, L0, D)
        ups.append(up)
    fused = sum(ups[s] @ params["fuse"][s] for s in range(NUM_STAGES))    # (B, L0, D)
    h = fused * params["bn_scale"] + params["bn_shift"]
    h = jnp.maximum(h, 0.0)
    logits = h @ params["cls_w"] + params["cls_b"]                        # (B, L0, NL)
    return jnp.transpose(logits, (0, 2, 1))                               # (B, NL, L0)


# ------------------------------ parameter init --------------------------------
def make_params(key):
    D, NL = DECODER_HIDDEN, NUM_LABELS
    keys = jax.random.split(key, 32)
    ki = iter(keys)

    proj_w, proj_b = [], []
    for s in range(NUM_STAGES):
        # nn.Linear(C_s, D): weight (D, C_s), bias (D,). Pre-transpose to (C_s, D).
        proj_w.append(jax.random.normal(next(ki), (HIDDEN_SIZES[s], D), jnp.float32) * 0.05)
        proj_b.append(jax.random.normal(next(ki), (1, D), jnp.float32) * 0.05)

    interp = [jnp.asarray(linear_interp_matrix(LENGTHS[s], L0)) for s in range(NUM_STAGES)]

    # linear_fuse: Conv1d(4D, D, 1, bias=False), weight (D, 4D, 1).
    # Concat order in forward is reversed: [stage3, stage2, stage1, stage0].
    fuse_full = jax.random.normal(next(ki), (D, NUM_STAGES * D), jnp.float32) * 0.05
    fuse = []
    for s in range(NUM_STAGES):
        off = (NUM_STAGES - 1 - s) * D          # stage s lives at this channel offset
        fuse.append(jnp.transpose(fuse_full[:, off:off + D]))   # (D, D), pre-transposed

    # BatchNorm1d(D), eval mode: fold running stats + affine into scale/shift.
    gamma = 1.0 + 0.1 * jax.random.normal(next(ki), (D,), jnp.float32)
    beta = 0.1 * jax.random.normal(next(ki), (D,), jnp.float32)
    running_mean = 0.1 * jax.random.normal(next(ki), (D,), jnp.float32)
    running_var = 1.0 + 0.5 * jax.random.uniform(next(ki), (D,), jnp.float32)
    bn_scale = (gamma / jnp.sqrt(running_var + BN_EPS)).reshape(1, D)
    bn_shift = (beta - running_mean * gamma / jnp.sqrt(running_var + BN_EPS)).reshape(1, D)

    # classifier: Conv1d(D, NL, 1): weight (NL, D, 1) -> pre-transpose to (D, NL).
    cls_w = jax.random.normal(next(ki), (D, NL), jnp.float32) * 0.05
    cls_b = jax.random.normal(next(ki), (1, NL), jnp.float32) * 0.05

    return dict(proj_w=proj_w, proj_b=proj_b, interp=interp, fuse=fuse,
                bn_scale=bn_scale, bn_shift=bn_shift, cls_w=cls_w, cls_b=cls_b)


# ------------------------------------ main -------------------------------------
if __name__ == "__main__":
    key = jax.random.PRNGKey(0)
    k_par, k_in = jax.random.split(key)
    params = make_params(k_par)

    xs = []
    ks = jax.random.split(k_in, NUM_STAGES)
    for s in range(NUM_STAGES):
        xs.append(jax.random.normal(ks[s], (BATCH, LENGTHS[s], HIDDEN_SIZES[s]),
                                    jnp.float32))
    xs = tuple(xs)

    decode_head = make_decode_head(params)      # constants folded/uploaded once
    out = jax.block_until_ready(decode_head(*xs))

    ref = jax.block_until_ready(reference(xs, params))
    assert out.shape == (BATCH, NUM_LABELS, L0), out.shape
    np.testing.assert_allclose(np.asarray(out), np.asarray(ref), rtol=1e-4, atol=1e-4)

    # TODO(synk): training-mode BatchNorm1d (batch stats) and Dropout are not
    # modeled; this kernel implements eval-mode forward semantics.
    print("KERNEL_OK")
</pallas_src>

<mosaic_0001>
module attributes {stable_mosaic.version = 11 : i64} {
  func.func @decode_head_kernel(%arg0: memref<256x128xf32, #tpu.memory_space<vmem>>, %arg1: memref<392x128xf32, #tpu.memory_space<vmem>>, %arg2: memref<128x128xf32, #tpu.memory_space<vmem>>) attributes {dimension_semantics = [], scalar_prefetch = 0 : i64, scratch_operands = 0 : i64, tpu.core_type = #tpu.core_type<tc>} {
    %c0 = arith.constant 0 : index
    %c0_0 = arith.constant 0 : index
    %0 = vector.load %arg1[%c0, %c0_0] : memref<392x128xf32, #tpu.memory_space<vmem>>, vector<128x128xf32>
    %c128 = arith.constant 128 : index
    %c0_1 = arith.constant 0 : index
    %1 = vector.load %arg1[%c128, %c0_1] : memref<392x128xf32, #tpu.memory_space<vmem>>, vector<128x128xf32>
    %c256 = arith.constant 256 : index
    %c0_2 = arith.constant 0 : index
    %2 = vector.load %arg1[%c256, %c0_2] : memref<392x128xf32, #tpu.memory_space<vmem>>, vector<128x128xf32>
    %c384 = arith.constant 384 : index
    %c0_3 = arith.constant 0 : index
    %3 = vector.load %arg1[%c384, %c0_3] : memref<392x128xf32, #tpu.memory_space<vmem>>, vector<8x128xf32>
    %4 = vector.extract_strided_slice %3 {offsets = [0, 0], sizes = [1, 128], strides = [1, 1]} : vector<8x128xf32> to vector<1x128xf32>
    %5 = vector.extract_strided_slice %3 {offsets = [1, 0], sizes = [1, 128], strides = [1, 1]} : vector<8x128xf32> to vector<1x128xf32>
    %c0_4 = arith.constant 0 : index
    %c0_5 = arith.constant 0 : index
    %6 = vector.load %arg0[%c0_4, %c0_5] : memref<256x128xf32, #tpu.memory_space<vmem>>, vector<256x128xf32>
    %cst = arith.constant dense<0.000000e+00> : vector<256x128xf32>
    %7 = tpu.matmul %6, %0, %cst {dimension_numbers = #tpu.dot_dimension_numbers<[1], [0], [0], [1], [0, 0, 1, 1], [], []>} : vector<256x128xf32>, vector<128x128xf32>, vector<256x128xf32> -> vector<256x128xf32>
    %8 = vector.extract_strided_slice %7 {offsets = [0, 0], sizes = [128, 128], strides = [1, 1]} : vector<256x128xf32> to vector<128x128xf32>
    %9 = vector.extract_strided_slice %7 {offsets = [128, 0], sizes = [128, 128], strides = [1, 1]} : vector<256x128xf32> to vector<128x128xf32>
    %cst_6 = arith.constant dense<0.000000e+00> : vector<128x128xf32>
    %10 = tpu.matmul %1, %9, %cst_6 {dimension_numbers = #tpu.dot_dimension_numbers<[1], [0], [0], [1], [0, 0, 1, 1], [], []>} : vector<128x128xf32>, vector<128x128xf32>, vector<128x128xf32> -> vector<128x128xf32>
    %11 = arith.addf %8, %10 : vector<128x128xf32>
    %12 = vector.broadcast %4 : vector<1x128xf32> to vector<128x128xf32>
    %13 = arith.addf %11, %12 : vector<128x128xf32>
    %cst_7 = arith.constant 0.000000e+00 : f32
    %14 = vector.broadcast %cst_7 : f32 to vector<128x128xf32>
    %15 = arith.maximumf %13, %14 : vector<128x128xf32>
    %cst_8 = arith.constant dense<0.000000e+00> : vector<128x128xf32>
    %16 = tpu.matmul %15, %2, %cst_8 {dimension_numbers = #tpu.dot_dimension_numbers<[1], [0], [0], [1], [0, 0, 1, 1], [], []>} : vector<128x128xf32>, vector<128x128xf32>, vector<128x128xf32> -> vector<128x128xf32>
    %17 = vector.broadcast %5 : vector<1x128xf32> to vector<128x128xf32>
    %18 = arith.addf %16, %17 : vector<128x128xf32>
    %c0_9 = arith.constant 0 : index
    %c0_10 = arith.constant 0 : index
    %19 = vector.load %arg2[%c0_9, %c0_10] : memref<128x128xf32, #tpu.memory_space<vmem>>, vector<128x128xf32>
    tpu.vector_store %arg2[%c0_9, %c0_10], %18 {strides = array<i32>} : memref<128x128xf32, #tpu.memory_space<vmem>>, vector<128x128xf32>,
    return
  }
}

</mosaic_0001>

<bundles_post_ra>
// kernel: run.1
= control target key start
LH: loop header
LB: loop body
LE: loop exit
PB: predicated region body
PF: predicated region fallthrough
CT: control target
= control target key end

     0   :  { %s1439_s1 = inlined_call_operand.vmem [shape: f32[392,128], index: 1, kind: input, shape index: {}]   ;;  %s1440_s0 = inlined_call_operand.vmem [shape: f32[256,128], index: 0, kind: input, shape index: {}]   ;;  %s1441_s2 = inlined_call_operand.vmem [shape: f32[128,128], index: 2, kind: output, shape index: {}]  }
   0x1   :  { %v11_v0 = vld [vmem:[%s1439_s1] sm:$0xff]  ;;  %v12_v1 = vld [vmem:[%s1439_s1 + $0x8] sm:$0xff]  ;;  %v13_v2 = vld [vmem:[%s1439_s1 + $0x10] sm:$0xff] }
   0x2   :  { %v987_v3 = vpack.c.bf16 %v12_v1, %v11_v0  ;;  %v14_v4 = vld [vmem:[%s1439_s1 + $0x18] sm:$0xff]  ;;  %v15_v6 = vld [vmem:[%s1439_s1 + $0x20] sm:$0xff]  ;;  %v16_v7 = vld [vmem:[%s1439_s1 + $0x28] sm:$0xff] }
   0x3   :  { %v991_v5 = vpack.c.bf16 %v14_v4, %v13_v2  ;;  %v995_v8 = vpack.c.bf16 %v16_v7, %v15_v6  ;;  %v76_v9 = vld [vmem:[%s1440_s0 + $0x80] sm:$0xff]  ;;  %v17_v10 = vld [vmem:[%s1439_s1 + $0x30] sm:$0xff]  ;;  %v18_v11 = vld [vmem:[%s1439_s1 + $0x38] sm:$0xff] }
   0x4   :  { %1083 = vmatprep.subr.bf16.mxu1 %v987_v3  ;;  %988 = vmatprep.subr.bf16.mxu0 %v987_v3  ;;  %v999_v12 = vpack.c.bf16 %v18_v11, %v17_v10  ;;  %v19_v13 = vld [vmem:[%s1439_s1 + $0x40] sm:$0xff]  ;;  %v20_v14 = vld [vmem:[%s1439_s1 + $0x48] sm:$0xff]  ;;  %v21_v16 = vld [vmem:[%s1439_s1 + $0x50] sm:$0xff] }
   0x5   :  { %1091 = vmatpush3.bf16.msra.mxu1 %v987_v3  ;;  %990 = vmatpush3.bf16.msra.mxu0 %v987_v3  ;;  %v1003_v15 = vpack.c.bf16 %v20_v14, %v19_v13  ;;  %v22_v17 = vld [vmem:[%s1439_s1 + $0x58] sm:$0xff]  ;;  %v23_v19 = vld [vmem:[%s1439_s1 + $0x60] sm:$0xff]  ;;  %v24_v20 = vld [vmem:[%s1439_s1 + $0x68] sm:$0xff] }
   0x6   :  { %1084 = vmatprep.subr.bf16.mxu1 %v991_v5  ;;  %992 = vmatprep.subr.bf16.mxu0 %v991_v5  ;;  %v1007_v18 = vpack.c.bf16 %v22_v17, %v21_v16  ;;  %v1011_v21 = vpack.c.bf16 %v24_v20, %v23_v19  ;;  %v25_v22 = vld [vmem:[%s1439_s1 + $0x70] sm:$0xff]  ;;  %v26_v23 = vld [vmem:[%s1439_s1 + $0x78] sm:$0xff]  ;;  %v77_v25 = vld [vmem:[%s1440_s0 + $0x88] sm:$0xff] }
   0x7   :  { %851 = vmatprep.mubr.f32.mxu1 %v76_v9  ;;  %v1015_v24 = vpack.c.bf16 %v26_v23, %v25_v22  ;;  %v78_v26 = vld [vmem:[%s1440_s0 + $0x90] sm:$0xff]  ;;  %v79_v27 = vld [vmem:[%s1440_s0 + $0x98] sm:$0xff]  ;;  %v80_v28 = vld [vmem:[%s1440_s0 + $0xa0] sm:$0xff] }
   0x8   :  { %v81_v29 = vld [vmem:[%s1440_s0 + $0xa8] sm:$0xff]  ;;  %v82_v30 = vld [vmem:[%s1440_s0 + $0xb0] sm:$0xff]  ;;  %v83_v31 = vld [vmem:[%s1440_s0 + $0xb8] sm:$0xff] }
   0x9   :  { %1092 = vmatpush3.bf16.msra.mxu1 %v991_v5  ;;  %994 = vmatpush3.bf16.msra.mxu0 %v991_v5  ;;  %v84_v32 = vld [vmem:[%s1440_s0 + $0xc0] sm:$0xff]  ;;  %v85_v33 = vld [vmem:[%s1440_s0 + $0xc8] sm:$0xff]  ;;  %v86_v34 = vld [vmem:[%s1440_s0 + $0xd0] sm:$0xff] }
   0xa   :  { %1085 = vmatprep.subr.bf16.mxu1 %v995_v8  ;;  %996 = vmatprep.subr.bf16.mxu0 %v995_v8  ;;  %v87_v35 = vld [vmem:[%s1440_s0 + $0xd8] sm:$0xff]  ;;  %v88_v36 = vld [vmem:[%s1440_s0 + $0xe0] sm:$0xff]  ;;  %v89_v37 = vld [vmem:[%s1440_s0 + $0xe8] sm:$0xff] }
   0xb   :  { %v90_v38 = vld [vmem:[%s1440_s0 + $0xf0] sm:$0xff]  ;;  %v91_v39 = vld [vmem:[%s1440_s0 + $0xf8] sm:$0xff]  ;;  %v60_v40 = vld [vmem:[%s1440_s0] sm:$0xff] }
   0xc   :  { %v61_v41 = vld [vmem:[%s1440_s0 + $0x8] sm:$0xff]  ;;  %827 = vmatprep.mubr.f32.mxu0 %v60_v40  ;;  %v62_v42 = vld [vmem:[%s1440_s0 + $0x10] sm:$0xff]  ;;  %v63_v43 = vld [vmem:[%s1440_s0 + $0x18] sm:$0xff] }
   0xd   :  { %1093 = vmatpush3.bf16.msra.mxu1 %v995_v8  ;;  %998 = vmatpush3.bf16.msra.mxu0 %v995_v8  ;;  %v64_v44 = vld [vmem:[%s1440_s0 + $0x20] sm:$0xff]  ;;  %v65_v45 = vld [vmem:[%s1440_s0 + $0x28] sm:$0xff]  ;;  %v66_v46 = vld [vmem:[%s1440_s0 + $0x30] sm:$0xff] }
   0xe   :  { %1086 = vmatprep.subr.bf16.mxu1 %v999_v12  ;;  %1000 = vmatprep.subr.bf16.mxu0 %v999_v12  ;;  %v67_v47 = vld [vmem:[%s1440_s0 + $0x38] sm:$0xff]  ;;  %v68_v48 = vld [vmem:[%s1440_s0 + $0x40] sm:$0xff]  ;;  %v69_v49 = vld [vmem:[%s1440_s0 + $0x48] sm:$0xff] }
   0xf   :  { %v70_v50 = vld [vmem:[%s1440_s0 + $0x50] sm:$0xff]  ;;  %v71_v51 = vld [vmem:[%s1440_s0 + $0x58] sm:$0xff]  ;;  %v72_v52 = vld [vmem:[%s1440_s0 + $0x60] sm:$0xff] }
  0x10   :  { %v73_v53 = vld [vmem:[%s1440_s0 + $0x68] sm:$0xff]  ;;  %v74_v54 = vld [vmem:[%s1440_s0 + $0x70] sm:$0xff]  ;;  %v75_v55 = vld [vmem:[%s1440_s0 + $0x78] sm:$0xff] }
  0x11   :  { %1094 = vmatpush3.bf16.msra.mxu1 %v999_v12  ;;  %1002 = vmatpush3.bf16.msra.mxu0 %v999_v12  ;;  %v27_v56 = vld [vmem:[%s1439_s1 + $0x80] sm:$0xff]  ;;  %v44_v58 = vld [vmem:[%s1439_s1 + $0x108] sm:$0xff]  ;;  %v45_v59 = vld [vmem:[%s1439_s1 + $0x110] sm:$0xff] }
  0x12   :  { %1087 = vmatprep.subr.bf16.mxu1 %v1003_v15  ;;  %1004 = vmatprep.subr.bf16.mxu0 %v1003_v15  ;;  %v43_v57 = vld [vmem:[%s1439_s1 + $0x100] sm:$0xff]  ;;  %v46_v61 = vld [vmem:[%s1439_s1 + $0x118] sm:$0xff]  ;;  %v48_v0 = vld [vmem:[%s1439_s1 + $0x128] sm:$0xff] }
  0x13   :  { %v1051_v60 = vpack.c.bf16 %v44_v58, %v43_v57  ;;  %v1055_v62 = vpack.c.bf16 %v46_v61, %v45_v59  ;;  %v47_v63 = vld [vmem:[%s1439_s1 + $0x120] sm:$0xff]  ;;  %v49_v2 = vld [vmem:[%s1439_s1 + $0x130] sm:$0xff]  ;;  %v50_v3 = vld [vmem:[%s1439_s1 + $0x138] sm:$0xff] }
  0x14   :  { %v1059_v1 = vpack.c.bf16 %v48_v0, %v47_v63  ;;  %v1063_v4 = vpack.c.bf16 %v50_v3, %v49_v2  ;;  %v51_v5 = vld [vmem:[%s1439_s1 + $0x140] sm:$0xff]  ;;  %v52_v6 = vld [vmem:[%s1439_s1 + $0x148] sm:$0xff]  ;;  %v53_v8 = vld [vmem:[%s1439_s1 + $0x150] sm:$0xff] }
  0x15   :  { %1095 = vmatpush3.bf16.msra.mxu1 %v1003_v15  ;;  %1006 = vmatpush3.bf16.msra.mxu0 %v1003_v15  ;;  %v1067_v7 = vpack.c.bf16 %v52_v6, %v51_v5  ;;  %v54_v9 = vld [vmem:[%s1439_s1 + $0x158] sm:$0xff]  ;;  %v55_v11 = vld [vmem:[%s1439_s1 + $0x160] sm:$0xff]  ;;  %v56_v12 = vld [vmem:[%s1439_s1 + $0x168] sm:$0xff] }
  0x16   :  { %1088 = vmatprep.subr.bf16.mxu1 %v1007_v18  ;;  %1008 = vmatprep.subr.bf16.mxu0 %v1007_v18  ;;  %v1071_v10 = vpack.c.bf16 %v54_v9, %v53_v8  ;;  %v1075_v13 = vpack.c.bf16 %v56_v12, %v55_v11  ;;  %v30_v40 = vld [vmem:[%s1439_s1 + $0x98] sm:$0xff]  ;;  %v59_v59 = vld [vmem:[%s1439_s1 + $0x180] sm:$0xff] }
  0x19   :  { %1096 = vmatpush3.bf16.msra.mxu1 %v1007_v18  ;;  %1010 = vmatpush3.bf16.msra.mxu0 %v1007_v18 }
  0x1a   :  { %1089 = vmatprep.subr.bf16.mxu1 %v1011_v21  ;;  %1012 = vmatprep.subr.bf16.mxu0 %v1011_v21 }
  0x1d   :  { %1097 = vmatpush3.bf16.msra.mxu1 %v1011_v21  ;;  %1014 = vmatpush3.bf16.msra.mxu0 %v1011_v21 }
  0x1e   :  { %1090 = vmatprep.subr.bf16.mxu1 %v1015_v24  ;;  %1016 = vmatprep.subr.bf16.mxu0 %v1015_v24 }
  0x21   :  { %1098 = vmatpush3.bf16.msra.mxu1 %v1015_v24  ;;  %1018 = vmatpush3.bf16.msra.mxu0 %v1015_v24 }
  0x22   :  { %1052 = vmatprep.subr.bf16.mxu1 %v1051_v60 }
  0x24   :  { %852 = vmatmul.mubr.f32.vlgmr.msra.gmra.mrb[0].mxu1 %v77_v25  ;;  %828 = vmatmul.mubr.f32.vlgmr.msra.gmra.mrb[0].mxu0 %v61_v41  ;;  %v31_v41 = vld [vmem:[%s1439_s1 + $0xa0] sm:$0xff] }
  0x25   :  { %854 = vmatprep.mubr.f32.mxu1 %v78_v26  ;;  %830 = vmatprep.mubr.f32.mxu0 %v62_v42  ;;  %v32_v42 = vld [vmem:[%s1439_s1 + $0xa8] sm:$0xff] }
  0x26   :  { %1054 = vmatpush3.bf16.msra.mxu1 %v1051_v60 }
  0x27   :  { %1056 = vmatprep.subr.bf16.mxu1 %v1055_v62 }
  0x28   :  { %855 = vmatmul.mubr.f32.gmra.mrb[2].mxu1 %v79_v27  ;;  %831 = vmatmul.mubr.f32.gmra.mrb[2].mxu0 %v63_v43  ;;  %v33_v43 = vld [vmem:[%s1439_s1 + $0xb0] sm:$0xff] }
  0x29   :  { %857 = vmatprep.mubr.f32.mxu1 %v80_v28  ;;  %833 = vmatprep.mubr.f32.mxu0 %v64_v44  ;;  %v34_v44 = vld [vmem:[%s1439_s1 + $0xb8] sm:$0xff] }
  0x2a   :  { %1058 = vmatpush3.bf16.msra.mxu1 %v1055_v62 }
  0x2b   :  { %1060 = vmatprep.subr.bf16.mxu1 %v1059_v1 }
  0x2c   :  { %858 = vmatmul.mubr.f32.gmra.mrb[4].mxu1 %v81_v29  ;;  %834 = vmatmul.mubr.f32.gmra.mrb[4].mxu0 %v65_v45  ;;  %v35_v45 = vld [vmem:[%s1439_s1 + $0xc0] sm:$0xff] }
  0x2d   :  { %860 = vmatprep.mubr.f32.mxu1 %v82_v30  ;;  %836 = vmatprep.mubr.f32.mxu0 %v66_v46  ;;  %v36_v46 = vld [vmem:[%s1439_s1 + $0xc8] sm:$0xff] }
  0x2e   :  { %1062 = vmatpush3.bf16.msra.mxu1 %v1059_v1 }
  0x2f   :  { %1064 = vmatprep.subr.bf16.mxu1 %v1063_v4 }
  0x30   :  { %861 = vmatmul.mubr.f32.gmra.mrb[6].mxu1 %v83_v31  ;;  %837 = vmatmul.mubr.f32.gmra.mrb[6].mxu0 %v67_v47  ;;  %v37_v47 = vld [vmem:[%s1439_s1 + $0xd0] sm:$0xff] }
  0x31   :  { %863 = vmatprep.mubr.f32.mxu1 %v84_v32  ;;  %839 = vmatprep.mubr.f32.mxu0 %v68_v48  ;;  %v38_v48 = vld [vmem:[%s1439_s1 + $0xd8] sm:$0xff] }
  0x32   :  { %1066 = vmatpush3.bf16.msra.mxu1 %v1063_v4 }
  0x33   :  { %1068 = vmatprep.subr.bf16.mxu1 %v1067_v7 }
  0x34   :  { %864 = vmatmul.mubr.f32.gmra.mrb[8].mxu1 %v85_v33  ;;  %840 = vmatmul.mubr.f32.gmra.mrb[8].mxu0 %v69_v49  ;;  %v39_v49 = vld [vmem:[%s1439_s1 + $0xe0] sm:$0xff] }
  0x35   :  { %866 = vmatprep.mubr.f32.mxu1 %v86_v34  ;;  %842 = vmatprep.mubr.f32.mxu0 %v70_v50  ;;  %v40_v50 = vld [vmem:[%s1439_s1 + $0xe8] sm:$0xff] }
  0x36   :  { %1070 = vmatpush3.bf16.msra.mxu1 %v1067_v7 }
  0x37   :  { %1072 = vmatprep.subr.bf16.mxu1 %v1071_v10 }
  0x38   :  { %867 = vmatmul.mubr.f32.gmra.mrb[10].mxu1 %v87_v35  ;;  %843 = vmatmul.mubr.f32.gmra.mrb[10].mxu0 %v71_v51  ;;  %v41_v51 = vld [vmem:[%s1439_s1 + $0xf0] sm:$0xff] }
  0x39   :  { %869 = vmatprep.mubr.f32.mxu1 %v88_v36  ;;  %845 = vmatprep.mubr.f32.mxu0 %v72_v52  ;;  %v42_v52 = vld [vmem:[%s1439_s1 + $0xf8] sm:$0xff] }
  0x3a   :  { %1074 = vmatpush3.bf16.msra.mxu1 %v1071_v10 }
  0x3b   :  { %1076 = vmatprep.subr.bf16.mxu1 %v1075_v13 }
  0x3c   :  { %870 = vmatmul.mubr.f32.gmra.mrb[12].mxu1 %v89_v37  ;;  %846 = vmatmul.mubr.f32.gmra.mrb[12].mxu0 %v73_v53  ;;  %v57_v53 = vld [vmem:[%s1439_s1 + $0x170] sm:$0xff] }
  0x3d   :  { %872 = vmatprep.mubr.f32.mxu1 %v90_v38  ;;  %848 = vmatprep.mubr.f32.mxu0 %v74_v54  ;;  %v28_v38 = vld [vmem:[%s1439_s1 + $0x88] sm:$0xff]  ;;  %v58_v54 = vld [vmem:[%s1439_s1 + $0x178] sm:$0xff] }
  0x3e   :  { %1078 = vmatpush3.bf16.msra.mxu1 %v1075_v13 }
  0x40   :  { %873 = vmatmul.mubr.f32.gmra.mrb[14].mxu1 %v91_v39  ;;  %849 = vmatmul.mubr.f32.gmra.mrb[14].mxu0 %v75_v55  ;;  %v29_v39 = vld [vmem:[%s1439_s1 + $0x90] sm:$0xff]  ;;  %v1079_v55 = vpack.c.bf16 %v58_v54, %v57_v53 }
  0x41   :  { %907 = vmatprep.mubr.f32.mxu0 %v27_v56  ;;  %v478_v56 = vlaneseq }
  0x42   :  { %1080 = vmatprep.subr.bf16.mxu1 %v1079_v55 }
  0x43   :  { %1082 = vmatpush3.bf16.msra.mxu1 %v1079_v55  ;;  %v479_v57 = vshrl.u32 %v478_v56, 7 }
  0x45   :  { %v516_v58 = vsub.s32 1, %v479_v57  ;;  %v480_v61 = vsub.s32 0, %v479_v57 }
  0x47   :  { %v1373_v60 = vrot.slane %v59_v59, %v516_v58  ;;  %v481_v62 = vrot.slane %v59_v59, %v480_v61 }
  0xf7   :  { %v853_v14 = vpop.f32.mrb[0].mxu1 }
  0xf8   :  { %v238_v15 = vpop.f32.mrb[1].mxu1 }
  0xf9   :  { %v1019_v16 = vpack.c.bf16 %v853_v14, %v238_v15 }
  0xfb   :  { %v856_v17 = vpop.f32.mrb[2].mxu1  ;;  %1020 = vmatprep.subr.bf16.mxu0 %v1019_v16 }
  0xfc   :  { %v248_v18 = vpop.f32.mrb[3].mxu1  ;;  %1022 = vmatpush3.bf16.msra.mxu0 %v1019_v16 }
  0xfd   :  { %v1023_v19 = vpack.c.bf16 %v856_v17, %v248_v18 }
  0xff   :  { %v859_v20 = vpop.f32.mrb[4].mxu1  ;;  %1024 = vmatprep.subr.bf16.mxu0 %v1023_v19 }
 0x100   :  { %v258_v21 = vpop.f32.mrb[5].mxu1  ;;  %1026 = vmatpush3.bf16.msra.mxu0 %v1023_v19 }
 0x101   :  { %v1027_v22 = vpack.c.bf16 %v859_v20, %v258_v21 }
 0x103   :  { %v862_v23 = vpop.f32.mrb[6].mxu1  ;;  %1028 = vmatprep.subr.bf16.mxu0 %v1027_v22 }
 0x104   :  { %v268_v24 = vpop.f32.mrb[7].mxu1  ;;  %1030 = vmatpush3.bf16.msra.mxu0 %v1027_v22 }
 0x105   :  { %v1031_v25 = vpack.c.bf16 %v862_v23, %v268_v24 }
 0x107   :  { %v865_v26 = vpop.f32.mrb[8].mxu1  ;;  %1032 = vmatprep.subr.bf16.mxu0 %v1031_v25 }
 0x108   :  { %v278_v27 = vpop.f32.mrb[9].mxu1  ;;  %1034 = vmatpush3.bf16.msra.mxu0 %v1031_v25 }
 0x109   :  { %v1035_v28 = vpack.c.bf16 %v865_v26, %v278_v27 }
 0x10b   :  { %v868_v29 = vpop.f32.mrb[10].mxu1  ;;  %1036 = vmatprep.subr.bf16.mxu0 %v1035_v28 }
 0x10c   :  { %v288_v30 = vpop.f32.mrb[11].mxu1  ;;  %1038 = vmatpush3.bf16.msra.mxu0 %v1035_v28 }
 0x10d   :  { %v1039_v31 = vpack.c.bf16 %v868_v29, %v288_v30 }
 0x10f   :  { %v871_v32 = vpop.f32.mrb[12].mxu1  ;;  %1040 = vmatprep.subr.bf16.mxu0 %v1039_v31 }
 0x110   :  { %v298_v33 = vpop.f32.mrb[13].mxu1  ;;  %1042 = vmatpush3.bf16.msra.mxu0 %v1039_v31 }
 0x111   :  { %v1043_v34 = vpack.c.bf16 %v871_v32, %v298_v33 }
 0x113   :  { %v874_v35 = vpop.f32.mrb[14].mxu1  ;;  %1044 = vmatprep.subr.bf16.mxu0 %v1043_v34 }
 0x114   :  { %v308_v36 = vpop.f32.mrb[15].mxu1  ;;  %1046 = vmatpush3.bf16.msra.mxu0 %v1043_v34 }
 0x115   :  { %v1047_v37 = vpack.c.bf16 %v874_v35, %v308_v36 }
 0x117   :  { %1048 = vmatprep.subr.bf16.mxu0 %v1047_v37 }
 0x118   :  { %1050 = vmatpush3.bf16.msra.mxu0 %v1047_v37 }
 0x11b   :  { %908 = vmatmul.mubr.f32.vlgmr.msra.gmra.mrb[0].mxu0 %v28_v38 }
 0x11c   :  { %910 = vmatprep.mubr.f32.mxu0 %v29_v39 }
 0x11f   :  { %911 = vmatmul.mubr.f32.gmra.mrb[2].mxu0 %v30_v40 }
 0x120   :  { %913 = vmatprep.mubr.f32.mxu0 %v31_v41 }
 0x123   :  { %914 = vmatmul.mubr.f32.gmra.mrb[4].mxu0 %v32_v42 }
 0x124   :  { %916 = vmatprep.mubr.f32.mxu0 %v33_v43 }
 0x127   :  { %917 = vmatmul.mubr.f32.gmra.mrb[6].mxu0 %v34_v44 }
 0x128   :  { %919 = vmatprep.mubr.f32.mxu0 %v35_v45 }
 0x12b   :  { %920 = vmatmul.mubr.f32.gmra.mrb[8].mxu0 %v36_v46 }
 0x12c   :  { %922 = vmatprep.mubr.f32.mxu0 %v37_v47 }
 0x12f   :  { %923 = vmatmul.mubr.f32.gmra.mrb[10].mxu0 %v38_v48 }
 0x130   :  { %925 = vmatprep.mubr.f32.mxu0 %v39_v49 }
 0x133   :  { %926 = vmatmul.mubr.f32.gmra.mrb[12].mxu0 %v40_v50 }
 0x134   :  { %928 = vmatprep.mubr.f32.mxu0 %v41_v51 }
 0x137   :  { %929 = vmatmul.mubr.f32.gmra.mrb[14].mxu0 %v42_v52 }
 0x1ee   :  { %v909_v63 = vpop.f32.mrb[0].mxu0 }
 0x1ef   :  { %v483_v0 = vadd.f32 %v909_v63, %v481_v62  ;;  %v383_v1 = vpop.f32.mrb[1].mxu0 }
 0x1f0   :  { %v482_v2 = vadd.f32 %v481_v62, %v383_v1 }
 0x1f1   :  { %v499_v5 = vmax.f32 %v483_v0, 0.0 }
 0x1f2   :  { %v498_v3 = vmax.f32 %v482_v2, 0.0  ;;  %v912_v4 = vpop.f32.mrb[2].mxu0 }
 0x1f3   :  { %v485_v6 = vadd.f32 %v912_v4, %v481_v62  ;;  %v393_v7 = vpop.f32.mrb[3].mxu0 }
 0x1f4   :  { %v484_v8 = vadd.f32 %v481_v62, %v393_v7  ;;  %963 = vmatprep.mubr.f32.mxu1 %v498_v3 }
 0x1f5   :  { %964 = vmatmul.mubr.f32.vlgmr.msra.gmra.mrb[16].mxu1 %v499_v5  ;;  %v501_v11 = vmax.f32 %v485_v6, 0.0 }
 0x1f6   :  { %v500_v9 = vmax.f32 %v484_v8, 0.0  ;;  %v915_v10 = vpop.f32.mrb[4].mxu0 }
 0x1f7   :  { %v487_v12 = vadd.f32 %v915_v10, %v481_v62  ;;  %v403_v13 = vpop.f32.mrb[5].mxu0 }
 0x1f8   :  { %v486_v14 = vadd.f32 %v481_v62, %v403_v13  ;;  %966 = vmatprep.mubr.f32.mxu1 %v500_v9 }
 0x1f9   :  { %967 = vmatmul.mubr.f32.gmra.mrb[18].mxu1 %v501_v11  ;;  %v503_v17 = vmax.f32 %v487_v12, 0.0 }
 0x1fa   :  { %v502_v15 = vmax.f32 %v486_v14, 0.0  ;;  %v918_v16 = vpop.f32.mrb[6].mxu0 }
 0x1fb   :  { %v489_v18 = vadd.f32 %v918_v16, %v481_v62  ;;  %v413_v19 = vpop.f32.mrb[7].mxu0 }
 0x1fc   :  { %v488_v20 = vadd.f32 %v481_v62, %v413_v19  ;;  %969 = vmatprep.mubr.f32.mxu1 %v502_v15 }
 0x1fd   :  { %970 = vmatmul.mubr.f32.gmra.mrb[20].mxu1 %v503_v17  ;;  %v505_v23 = vmax.f32 %v489_v18, 0.0 }
 0x1fe   :  { %v504_v21 = vmax.f32 %v488_v20, 0.0  ;;  %v921_v22 = vpop.f32.mrb[8].mxu0 }
 0x1ff   :  { %v491_v24 = vadd.f32 %v921_v22, %v481_v62  ;;  %v423_v25 = vpop.f32.mrb[9].mxu0 }
 0x200   :  { %v490_v26 = vadd.f32 %v481_v62, %v423_v25  ;;  %972 = vmatprep.mubr.f32.mxu1 %v504_v21 }
 0x201   :  { %973 = vmatmul.mubr.f32.gmra.mrb[22].mxu1 %v505_v23  ;;  %v507_v29 = vmax.f32 %v491_v24, 0.0 }
 0x202   :  { %v506_v27 = vmax.f32 %v490_v26, 0.0  ;;  %v924_v28 = vpop.f32.mrb[10].mxu0 }
 0x203   :  { %v493_v30 = vadd.f32 %v924_v28, %v481_v62  ;;  %v433_v31 = vpop.f32.mrb[11].mxu0 }
 0x204   :  { %v492_v32 = vadd.f32 %v481_v62, %v433_v31  ;;  %975 = vmatprep.mubr.f32.mxu1 %v506_v27 }
 0x205   :  { %976 = vmatmul.mubr.f32.gmra.mrb[24].mxu1 %v507_v29  ;;  %v509_v35 = vmax.f32 %v493_v30, 0.0 }
 0x206   :  { %v508_v33 = vmax.f32 %v492_v32, 0.0  ;;  %v927_v34 = vpop.f32.mrb[12].mxu0 }
 0x207   :  { %v495_v36 = vadd.f32 %v927_v34, %v481_v62  ;;  %v443_v37 = vpop.f32.mrb[13].mxu0 }
 0x208   :  { %v494_v38 = vadd.f32 %v481_v62, %v443_v37  ;;  %978 = vmatprep.mubr.f32.mxu1 %v508_v33 }
 0x209   :  { %979 = vmatmul.mubr.f32.gmra.mrb[26].mxu1 %v509_v35  ;;  %v511_v41 = vmax.f32 %v495_v36, 0.0 }
 0x20a   :  { %v510_v39 = vmax.f32 %v494_v38, 0.0  ;;  %v930_v40 = vpop.f32.mrb[14].mxu0 }
 0x20b   :  { %v497_v42 = vadd.f32 %v930_v40, %v481_v62  ;;  %v453_v43 = vpop.f32.mrb[15].mxu0 }
 0x20c   :  { %v496_v44 = vadd.f32 %v481_v62, %v453_v43  ;;  %981 = vmatprep.mubr.f32.mxu1 %v510_v39 }
 0x20d   :  { %982 = vmatmul.mubr.f32.gmra.mrb[28].mxu1 %v511_v41  ;;  %v513_v46 = vmax.f32 %v497_v42, 0.0 }
 0x20e   :  { %v512_v45 = vmax.f32 %v496_v44, 0.0 }
 0x210   :  { %984 = vmatprep.mubr.f32.mxu1 %v512_v45 }
 0x211   :  { %985 = vmatmul.mubr.f32.gmra.mrb[30].mxu1 %v513_v46 }
 0x2c8   :  { %v965_v47 = vpop.f32.mrb[16].mxu1 }
 0x2c9   :  { %v590_v48 = vadd.f32 %v965_v47, %v1373_v60  ;;  %v584_v49 = vpop.f32.mrb[17].mxu1 }
 0x2ca   :  { %v585_v50 = vadd.f32 %v584_v49, %v1373_v60 }
 0x2cb   :  { %664 = vst [vmem:[%s1441_s2 + $0x8] sm:$0xff] %v590_v48 }
 0x2cc   :  { %663 = vst [vmem:[%s1441_s2] sm:$0xff] %v585_v50  ;;  %v968_v51 = vpop.f32.mrb[18].mxu1 }
 0x2cd   :  { %v600_v52 = vadd.f32 %v968_v51, %v1373_v60  ;;  %v594_v53 = vpop.f32.mrb[19].mxu1 }
 0x2ce   :  { %v595_v54 = vadd.f32 %v594_v53, %v1373_v60 }
 0x2cf   :  { %666 = vst [vmem:[%s1441_s2 + $0x18] sm:$0xff] %v600_v52 }
 0x2d0   :  { %665 = vst [vmem:[%s1441_s2 + $0x10] sm:$0xff] %v595_v54  ;;  %v971_v55 = vpop.f32.mrb[20].mxu1 }
 0x2d1   :  { %v610_v56 = vadd.f32 %v971_v55, %v1373_v60  ;;  %v604_v57 = vpop.f32.mrb[21].mxu1 }
 0x2d2   :  { %v605_v58 = vadd.f32 %v604_v57, %v1373_v60 }
 0x2d3   :  { %668 = vst [vmem:[%s1441_s2 + $0x28] sm:$0xff] %v610_v56 }
 0x2d4   :  { %667 = vst [vmem:[%s1441_s2 + $0x20] sm:$0xff] %v605_v58  ;;  %v974_v59 = vpop.f32.mrb[22].mxu1 }
 0x2d5   :  { %v620_v61 = vadd.f32 %v974_v59, %v1373_v60  ;;  %v614_v62 = vpop.f32.mrb[23].mxu1 }
 0x2d6   :  { %v615_v63 = vadd.f32 %v614_v62, %v1373_v60 }
 0x2d7   :  { %670 = vst [vmem:[%s1441_s2 + $0x38] sm:$0xff] %v620_v61 }
 0x2d8   :  { %669 = vst [vmem:[%s1441_s2 + $0x30] sm:$0xff] %v615_v63  ;;  %v977_v0 = vpop.f32.mrb[24].mxu1 }
 0x2d9   :  { %v630_v1 = vadd.f32 %v977_v0, %v1373_v60  ;;  %v624_v2 = vpop.f32.mrb[25].mxu1 }
 0x2da   :  { %v625_v3 = vadd.f32 %v624_v2, %v1373_v60 }
 0x2db   :  { %672 = vst [vmem:[%s1441_s2 + $0x48] sm:$0xff] %v630_v1 }
 0x2dc   :  { %671 = vst [vmem:[%s1441_s2 + $0x40] sm:$0xff] %v625_v3  ;;  %v980_v4 = vpop.f32.mrb[26].mxu1 }
 0x2dd   :  { %v640_v5 = vadd.f32 %v980_v4, %v1373_v60  ;;  %v634_v6 = vpop.f32.mrb[27].mxu1 }
 0x2de   :  { %v635_v7 = vadd.f32 %v634_v6, %v1373_v60 }
 0x2df   :  { %674 = vst [vmem:[%s1441_s2 + $0x58] sm:$0xff] %v640_v5 }
 0x2e0   :  { %673 = vst [vmem:[%s1441_s2 + $0x50] sm:$0xff] %v635_v7  ;;  %v983_v8 = vpop.f32.mrb[28].mxu1 }
 0x2e1   :  { %v650_v9 = vadd.f32 %v983_v8, %v1373_v60  ;;  %v644_v10 = vpop.f32.mrb[29].mxu1 }
 0x2e2   :  { %v645_v11 = vadd.f32 %v644_v10, %v1373_v60 }
 0x2e3   :  { %676 = vst [vmem:[%s1441_s2 + $0x68] sm:$0xff] %v650_v9 }
 0x2e4   :  { %675 = vst [vmem:[%s1441_s2 + $0x60] sm:$0xff] %v645_v11  ;;  %v986_v12 = vpop.f32.mrb[30].mxu1 }
 0x2e5   :  { %v660_v13 = vadd.f32 %v986_v12, %v1373_v60  ;;  %v654_v14 = vpop.f32.mrb[31].mxu1 }
 0x2e6   :  { %v655_v15 = vadd.f32 %v654_v14, %v1373_v60 }
 0x2e7   :  { %678 = vst [vmem:[%s1441_s2 + $0x78] sm:$0xff] %v660_v13 }
 0x2e8   :  { %677 = vst [vmem:[%s1441_s2 + $0x70] sm:$0xff] %v655_v15 }

</bundles_post_ra>
